<compile_context>
chip_gen: v6e
topology: v6e:2x2x1
jax: 0.10.0
libtpu: 0.0.40
codegen_flags: <defaults>
</compile_context>

<pallas_src>
import functools

import jax
import jax.numpy as jnp
from jax import lax
from jax.experimental import pallas as pl
from jax.experimental.pallas import tpu as pltpu

EPS = 1e-5
MOMENTUM = 0.1
LANES = 128
SUBLANES = 8


def _vmem_capacity_bytes():
    """Physical per-core VMEM of the local TPU (fallback: v7x's 64 MiB)."""
    try:
        cap = int(pltpu.get_tpu_info().vmem_capacity_bytes)
        if cap > 0:
            return max(32 * 1024 * 1024, min(cap, 128 * 1024 * 1024))
    except Exception:
        pass
    return 64 * 1024 * 1024


def _bn1d_single_pass_kernel(x_ref, p_ref, y_ref, stats_ref, *, n_rows):
    """All batch rows resident in VMEM: centered (two-pass-in-VMEM) stats."""
    x = x_ref[...].astype(jnp.float32)                     # (N, TILE_F)
    inv_n = 1.0 / n_rows

    mean = jnp.sum(x, axis=0, keepdims=True) * inv_n       # (1, TILE_F)
    centered = x - mean
    var = jnp.sum(centered * centered, axis=0, keepdims=True) * inv_n  # biased

    inv_std = lax.rsqrt(var + EPS)
    weight = p_ref[0:1, :]
    bias = p_ref[1:2, :]
    rm = p_ref[2:3, :]
    rv = p_ref[3:4, :]

    y_ref[...] = (centered * (weight * inv_std) + bias).astype(y_ref.dtype)

    stats_ref[...] = jnp.concatenate(
        [(1.0 - MOMENTUM) * rm + MOMENTUM * mean,
         (1.0 - MOMENTUM) * rv + MOMENTUM * var], axis=0)


def _bn1d_two_phase_kernel(x_ref, p_ref, y_ref, stats_ref,
                           sum_ref, sq_ref, mean_ref, scale_ref,
                           *, n_rows, block_n, n_blocks):
    """Large-batch path: grid=(F_blocks, 2*n_blocks), N axis is 'arbitrary'.

    Phase 1 (k < n_blocks): accumulate per-feature sum / sum-of-squares.
    Phase 2 (k >= n_blocks): re-read the x blocks and write normalized y.
    """
    k = pl.program_id(1)

    @pl.when(k == 0)
    def _():
        sum_ref[...] = jnp.zeros_like(sum_ref)
        sq_ref[...] = jnp.zeros_like(sq_ref)

    @pl.when(k < n_blocks)
    def _():
        x = x_ref[...].astype(jnp.float32)
        # Mask rows past the end of the batch (ragged last N block).
        row0 = k * block_n
        rows = lax.broadcasted_iota(jnp.int32, x.shape, 0) + row0
        x = jnp.where(rows < n_rows, x, 0.0)
        sum_ref[...] += jnp.sum(x, axis=0, keepdims=True)
        sq_ref[...] += jnp.sum(x * x, axis=0, keepdims=True)

    @pl.when(k == n_blocks - 1)
    def _():
        inv_n = 1.0 / n_rows
        mean = sum_ref[...] * inv_n
        var = jnp.maximum(sq_ref[...] * inv_n - mean * mean, 0.0)  # biased
        mean_ref[...] = mean
        scale_ref[...] = p_ref[0:1, :] * lax.rsqrt(var + EPS)
        stats_ref[...] = jnp.concatenate(
            [(1.0 - MOMENTUM) * p_ref[2:3, :] + MOMENTUM * mean,
             (1.0 - MOMENTUM) * p_ref[3:4, :] + MOMENTUM * var], axis=0)

    @pl.when(k >= n_blocks)
    def _():
        x = x_ref[...].astype(jnp.float32)
        y_ref[...] = ((x - mean_ref[...]) * scale_ref[...]
                      + p_ref[1:2, :]).astype(y_ref.dtype)


def _pick_tile_f(n_rows, f, itemsize, budget_bytes):
    """Lane-dense feature tile: wide enough for big DMAs, narrow enough to
    (a) fit ~5x N*TILE_F in the VMEM budget and (b) keep >=~4 grid steps so
    pipelining / dual-TC sharding stay active."""
    n_lane_blocks = pl.cdiv(f, LANES)
    target_steps = min(n_lane_blocks, 4)
    tf_steps = max(1, n_lane_blocks // target_steps) * LANES
    tf_vmem = (budget_bytes // (5 * max(n_rows, 1) * itemsize)) // LANES * LANES
    tf_vmem = max(LANES, tf_vmem)
    return min(tf_steps, tf_vmem)


def batchnorm1d(x, weight, bias, running_mean, running_var, *, block_n=None):
    """Training-mode BatchNorm1d forward.

    Args:
      x: (N, F) float32 or bfloat16
      weight, bias, running_mean, running_var: (F,) float32
      block_n: optional batch-tile override (forces the two-phase path).
    Returns:
      y: (N, F) same dtype as x
      new_running_mean, new_running_var: (F,) float32
    """
    n, f = x.shape
    itemsize = jnp.dtype(x.dtype).itemsize

    vmem_cap = _vmem_capacity_bytes()
    budget = (vmem_cap * 3) // 8        # per-step block working-set target
    vmem_limit = (vmem_cap * 3) // 4    # scoped-VMEM override

    # Pack the four tiny parameter vectors into one (4, F) array: one small
    # per-step DMA instead of four.
    params = jnp.stack([weight, bias, running_mean, running_var]).astype(jnp.float32)

    tile_f = _pick_tile_f(n, f, itemsize, budget)
    grid_f = pl.cdiv(f, tile_f)

    out_shape = (jax.ShapeDtypeStruct((n, f), x.dtype),
                 jax.ShapeDtypeStruct((2, f), jnp.float32))

    single_pass = block_n is None and 5 * n * tile_f * itemsize <= budget

    if single_pass:
        kernel = functools.partial(_bn1d_single_pass_kernel, n_rows=n)
        y, stats = pl.pallas_call(
            kernel,
            out_shape=out_shape,
            grid=(grid_f,),
            in_specs=[pl.BlockSpec((n, tile_f), lambda j: (0, j)),
                      pl.BlockSpec((4, tile_f), lambda j: (0, j))],
            out_specs=(pl.BlockSpec((n, tile_f), lambda j: (0, j)),
                       pl.BlockSpec((2, tile_f), lambda j: (0, j))),
            compiler_params=pltpu.CompilerParams(
                dimension_semantics=("parallel",),
                vmem_limit_bytes=vmem_limit),
        )(x, params)
    else:
        if block_n is None:
            block_n = (budget // (5 * tile_f * itemsize)) // SUBLANES * SUBLANES
        block_n = max(SUBLANES,
                      (int(block_n) + SUBLANES - 1) // SUBLANES * SUBLANES)
        block_n = min(block_n, (n + SUBLANES - 1) // SUBLANES * SUBLANES)
        n_blocks = pl.cdiv(n, block_n)

        kernel = functools.partial(_bn1d_two_phase_kernel, n_rows=n,
                                   block_n=block_n, n_blocks=n_blocks)
        y, stats = pl.pallas_call(
            kernel,
            out_shape=out_shape,
            grid=(grid_f, 2 * n_blocks),
            in_specs=[
                # Phase 1 and phase 2 both walk the N blocks 0..n_blocks-1.
                pl.BlockSpec((block_n, tile_f),
                             lambda j, k: (k % n_blocks, j)),
                pl.BlockSpec((4, tile_f), lambda j, k: (0, j)),
            ],
            out_specs=(
                # Stay parked on block 0 during phase 1 (never flushed until
                # phase 2 has written it), then follow the N blocks.
                pl.BlockSpec((block_n, tile_f),
                             lambda j, k: (jnp.maximum(k - n_blocks, 0), j)),
                pl.BlockSpec((2, tile_f), lambda j, k: (0, j)),
            ),
            scratch_shapes=[pltpu.VMEM((1, tile_f), jnp.float32)] * 4,
            compiler_params=pltpu.CompilerParams(
                dimension_semantics=("parallel", "arbitrary"),
                vmem_limit_bytes=vmem_limit),
        )(x, params)

    return y, stats[0], stats[1]


if __name__ == "__main__":
    key = jax.random.PRNGKey(0)
    k1, k2, k3, k4 = jax.random.split(key, 4)

    def ref(x, w, b, rm, rv):
        mean = x.mean(axis=0)
        var = x.var(axis=0)  # unbiased=False (ddof=0), as in the module
        y = w * (x - mean) / jnp.sqrt(var + EPS) + b
        return (y,
                (1 - MOMENTUM) * rm + MOMENTUM * mean,
                (1 - MOMENTUM) * rv + MOMENTUM * var)

    # --- Test 1: small MLP-style shapes -> single-pass path, ragged F tile.
    N, F = 8, 32
    x = jax.random.normal(k1, (N, F), dtype=jnp.float32)
    weight = jax.random.normal(k2, (F,), dtype=jnp.float32)
    bias = jax.random.normal(k3, (F,), dtype=jnp.float32)
    running_mean = jnp.zeros((F,), dtype=jnp.float32)
    running_var = jnp.ones((F,), dtype=jnp.float32)

    y, new_rm, new_rv = batchnorm1d(x, weight, bias, running_mean, running_var)
    jax.block_until_ready((y, new_rm, new_rv))

    y_r, rm_r, rv_r = ref(x, weight, bias, running_mean, running_var)
    assert jnp.allclose(y, y_r, atol=1e-4, rtol=1e-4)
    assert jnp.allclose(new_rm, rm_r, atol=1e-4, rtol=1e-4)
    assert jnp.allclose(new_rv, rv_r, atol=1e-4, rtol=1e-4)

    # --- Test 2: force the large-batch two-phase path at small shapes
    # (ragged tails on both the batch axis, 20 % 8 != 0, and the feature
    # axis, 200 % 128 != 0).
    N2, F2 = 20, 200
    x2 = jax.random.normal(k4, (N2, F2), dtype=jnp.float32)
    w2 = jax.random.normal(k2, (F2,), dtype=jnp.float32)
    b2 = jax.random.normal(k3, (F2,), dtype=jnp.float32)
    rm2 = jnp.zeros((F2,), dtype=jnp.float32)
    rv2 = jnp.ones((F2,), dtype=jnp.float32)

    y2, nrm2, nrv2 = batchnorm1d(x2, w2, b2, rm2, rv2, block_n=8)
    jax.block_until_ready((y2, nrm2, nrv2))

    y2_r, rm2_r, rv2_r = ref(x2, w2, b2, rm2, rv2)
    assert jnp.allclose(y2, y2_r, atol=1e-4, rtol=1e-4)
    assert jnp.allclose(nrm2, rm2_r, atol=1e-4, rtol=1e-4)
    assert jnp.allclose(nrv2, rv2_r, atol=1e-4, rtol=1e-4)

    print("KERNEL_OK")
</pallas_src>

<mosaic_0001>
module attributes {stable_mosaic.version = 11 : i64} {
  func.func @_bn1d_single_pass_kernel(%arg0: i32, %arg1: memref<8x128xf32, #tpu.memory_space<vmem>>, %arg2: memref<4x128xf32, #tpu.memory_space<vmem>>, %arg3: memref<8x128xf32, #tpu.memory_space<vmem>>, %arg4: memref<2x128xf32, #tpu.memory_space<vmem>>) attributes {dimension_semantics = [#tpu.dimension_semantics<parallel>], iteration_bounds = array<i64: 1>, scalar_prefetch = 0 : i64, scratch_operands = 0 : i64, tpu.core_type = #tpu.core_type<tc>, window_params = [{transform_indices = @transform_0, window_bounds = array<i64: 8, 128>}, {transform_indices = @transform_1, window_bounds = array<i64: 4, 128>}, {transform_indices = @transform_2, window_bounds = array<i64: 8, 128>}, {transform_indices = @transform_3, window_bounds = array<i64: 2, 128>}]} {
    %c0 = arith.constant 0 : index
    %c0_0 = arith.constant 0 : index
    %0 = vector.load %arg1[%c0, %c0_0] : memref<8x128xf32, #tpu.memory_space<vmem>>, vector<8x128xf32>
    %cst = arith.constant dense<0.000000e+00> : vector<128xf32>
    %1 = vector.multi_reduction <add>, %0, %cst [0] : vector<8x128xf32> to vector<128xf32>
    %2 = vector.shape_cast %1 : vector<128xf32> to vector<1x128xf32>
    %cst_1 = arith.constant 1.250000e-01 : f32
    %3 = vector.broadcast %cst_1 : f32 to vector<1x128xf32>
    %4 = arith.mulf %2, %3 : vector<1x128xf32>
    %5 = vector.broadcast %4 : vector<1x128xf32> to vector<8x128xf32>
    %6 = arith.subf %0, %5 : vector<8x128xf32>
    %7 = arith.mulf %6, %6 : vector<8x128xf32>
    %cst_2 = arith.constant dense<0.000000e+00> : vector<128xf32>
    %8 = vector.multi_reduction <add>, %7, %cst_2 [0] : vector<8x128xf32> to vector<128xf32>
    %9 = vector.shape_cast %8 : vector<128xf32> to vector<1x128xf32>
    %cst_3 = arith.constant 1.250000e-01 : f32
    %10 = vector.broadcast %cst_3 : f32 to vector<1x128xf32>
    %11 = arith.mulf %9, %10 : vector<1x128xf32>
    %cst_4 = arith.constant 9.99999974E-6 : f32
    %12 = vector.broadcast %cst_4 : f32 to vector<1x128xf32>
    %13 = arith.addf %11, %12 : vector<1x128xf32>
    %14 = math.rsqrt %13 : vector<1x128xf32>
    %c0_5 = arith.constant 0 : index
    %c0_6 = arith.constant 0 : index
    %15 = vector.load %arg2[%c0_5, %c0_6] : memref<4x128xf32, #tpu.memory_space<vmem>>, vector<1x128xf32>
    %c1 = arith.constant 1 : index
    %c0_7 = arith.constant 0 : index
    %16 = vector.load %arg2[%c1, %c0_7] : memref<4x128xf32, #tpu.memory_space<vmem>>, vector<1x128xf32>
    %c2 = arith.constant 2 : index
    %c0_8 = arith.constant 0 : index
    %17 = vector.load %arg2[%c2, %c0_8] : memref<4x128xf32, #tpu.memory_space<vmem>>, vector<1x128xf32>
    %c3 = arith.constant 3 : index
    %c0_9 = arith.constant 0 : index
    %18 = vector.load %arg2[%c3, %c0_9] : memref<4x128xf32, #tpu.memory_space<vmem>>, vector<1x128xf32>
    %19 = arith.mulf %15, %14 : vector<1x128xf32>
    %20 = vector.broadcast %19 : vector<1x128xf32> to vector<8x128xf32>
    %21 = arith.mulf %6, %20 : vector<8x128xf32>
    %22 = vector.broadcast %16 : vector<1x128xf32> to vector<8x128xf32>
    %23 = arith.addf %21, %22 : vector<8x128xf32>
    %c0_10 = arith.constant 0 : index
    %c0_11 = arith.constant 0 : index
    %24 = vector.load %arg3[%c0_10, %c0_11] : memref<8x128xf32, #tpu.memory_space<vmem>>, vector<8x128xf32>
    tpu.vector_store %arg3[%c0_10, %c0_11], %23 {strides = array<i32>} : memref<8x128xf32, #tpu.memory_space<vmem>>, vector<8x128xf32>,
    %cst_12 = arith.constant 0.899999976 : f32
    %25 = vector.broadcast %cst_12 : f32 to vector<1x128xf32>
    %26 = arith.mulf %25, %17 : vector<1x128xf32>
    %cst_13 = arith.constant 1.000000e-01 : f32
    %27 = vector.broadcast %cst_13 : f32 to vector<1x128xf32>
    %28 = arith.mulf %27, %4 : vector<1x128xf32>
    %29 = arith.addf %26, %28 : vector<1x128xf32>
    %cst_14 = arith.constant 0.899999976 : f32
    %30 = vector.broadcast %cst_14 : f32 to vector<1x128xf32>
    %31 = arith.mulf %30, %18 : vector<1x128xf32>
    %cst_15 = arith.constant 1.000000e-01 : f32
    %32 = vector.broadcast %cst_15 : f32 to vector<1x128xf32>
    %33 = arith.mulf %32, %11 : vector<1x128xf32>
    %34 = arith.addf %31, %33 : vector<1x128xf32>
    %35 = tpu.concatenate %29, %34 in 0 : vector<1x128xf32>, vector<1x128xf32> -> vector<2x128xf32>
    %c0_16 = arith.constant 0 : index
    %c0_17 = arith.constant 0 : index
    %36 = vector.load %arg4[%c0_16, %c0_17] : memref<2x128xf32, #tpu.memory_space<vmem>>, vector<2x128xf32>
    tpu.vector_store %arg4[%c0_16, %c0_17], %35 {strides = array<i32>} : memref<2x128xf32, #tpu.memory_space<vmem>>, vector<2x128xf32>,
    return
  }
  func.func @transform_0(%arg0: i32) -> (i32, i32) {
    %c0_i32 = arith.constant 0 : i32
    %c0_i32_0 = arith.constant 0 : i32
    return %c0_i32, %arg0 : i32, i32
  }
  func.func @transform_1(%arg0: i32) -> (i32, i32) {
    %c0_i32 = arith.constant 0 : i32
    %c0_i32_0 = arith.constant 0 : i32
    return %c0_i32, %arg0 : i32, i32
  }
  func.func @transform_2(%arg0: i32) -> (i32, i32) {
    %c0_i32 = arith.constant 0 : i32
    %c0_i32_0 = arith.constant 0 : i32
    return %c0_i32, %arg0 : i32, i32
  }
  func.func @transform_3(%arg0: i32) -> (i32, i32) {
    %c0_i32 = arith.constant 0 : i32
    %c0_i32_0 = arith.constant 0 : i32
    return %c0_i32, %arg0 : i32, i32
  }
}

</mosaic_0001>

<bundles_post_ra>
// kernel: tpu_custom_call.1
= control target key start
LH: loop header
LB: loop body
LE: loop exit
PB: predicated region body
PF: predicated region fallthrough
CT: control target
= control target key end

     0   :  { %9 = vsyncpa [#allocation3], 0  ;;  %s247_s0 = inlined_call_operand.hbm [shape: f32[8,32], index: 0, kind: input, shape index: {}]   ;;  %s248_s1 = inlined_call_operand.hbm [shape: f32[4,32], index: 1, kind: input, shape index: {}]   ;;  %s249_s2 = inlined_call_operand.hbm [shape: f32[8,32], index: 2, kind: output, shape index: {0}]   ;;  %s250_s3 = inlined_call_operand.hbm [shape: f32[2,32], index: 3, kind: output, shape index: {1}]  }
   0x1   :  { %10 = vsyncpa [#allocation6], 0 }
   0x2   :  { %11 = vsyncpa [#allocation4], 0 }
   0x3   :  { %12 = vsyncpa [#allocation9], 0  ;;  %s211_s12 = smov [#allocation2]   ;;  %s212_s14 = smov [#allocation5]  }
   0x4   :  { %s19_s13 = sshll.u32 %s211_s12, 4  ;;  %s29_s15 = sshll.u32 %s212_s14, 4  ;;  %s20_s13 = int_to_ptr.vmem [resolvable:$true] %s19_s13  ;;  %s30_s15 = int_to_ptr.vmem [resolvable:$true] %s29_s15 }
   0x5   :  { %s131_s16 = scalar_lea.vmem %s20_s13, 128  ;;  %p136_p1 = scmp.lt.s32.totalorder %s20_s13, %s20_s13 }
   0x6   :  { %p132_p0 = scmp.ne.s32.totalorder %s20_s13, %s131_s16  ;;  %p137_p2 = scmp.lt.s32.totalorder %s131_s16, %s131_s16 }
   0x8   :  { %p138_p3 = por %p137_p2, %p136_p1 }
   0xa   :  { %p139_p4 = pnand %p138_p3, %p132_p0 }
   0xc   :  { %142 = shalt.err (!%p139_p4)
}
   0xd   :  { %22 = dma.hbm_to_vmem [thread:$0]  %s247_s0, 128, %s20_s13, [#allocation3]  }
   0xe   :  { %s151_s19 = scalar_lea.vmem %s30_s15, 64  ;;  %p156_p6 = scmp.lt.s32.totalorder %s30_s15, %s30_s15 }
   0xf   :  { %p152_p5 = scmp.ne.s32.totalorder %s30_s15, %s151_s19  ;;  %p157_p7 = scmp.lt.s32.totalorder %s151_s19, %s151_s19 }
  0x11   :  { %p158_p8 = por %p157_p7, %p156_p6 }
  0x13   :  { %p159_p9 = pnand %p158_p8, %p152_p5 }
  0x15   :  { %162 = shalt.err (!%p159_p9)
}
  0x16   :  { %32 = dma.hbm_to_vmem [thread:$0]  %s248_s1, 64, %s30_s15, [#allocation6]  }
  0x17   :  { %203 = dma.done.wait [#allocation3], 128  }
  0x18   :  { %204 = vsyncadd [#allocation3], 4294967168 }
  0x19   :  { %205 = dma.done.wait [#allocation6], 64  }
  0x1a   :  { %206 = vsyncadd [#allocation6], 4294967232  ;;  %v39_v0 = vld [vmem:[#allocation2] sm:$0xff]  ;;  %v60_v15 = vld [vmem:[#allocation5 + $0x2] sm:$0x1]  ;;  %s213_s0 = smov [#allocation8]   ;;  %v63_v27 = vlaneseq }
  0x1b   :  { %v40_v1 = vrot.slane %v39_v0, 4  ;;  %v61_v16 = vld [vmem:[#allocation5 + $0x3] sm:$0x1]  ;;  %v74_v18 = vmul.f32 0.9, %v60_v15  ;;  %s102_s1 = sshll.u32 %s213_s0, 4  ;;  %s103_s1 = int_to_ptr.vmem [resolvable:$true] %s102_s1 }
  0x1c   :  { %v77_v21 = vmul.f32 0.9, %v61_v16  ;;  %vm83_vm0 = vcmask 1040384   ;;  %s163_s22 = scalar_lea.vmem %s103_s1, 32  ;;  %p168_p11 = scmp.lt.s32.totalorder %s103_s1, %s103_s1 }
  0x1d   :  { %v41_v2 = vadd.f32 %v40_v1, %v39_v0  ;;  %p164_p10 = scmp.ne.s32.totalorder %s103_s1, %s163_s22  ;;  %p169_p12 = scmp.lt.s32.totalorder %s163_s22, %s163_s22 }
  0x1f   :  { %v42_v3 = vrot.slane %v41_v2, 2  ;;  %p170_p13 = por %p169_p12, %p168_p11 }
  0x21   :  { %v43_v4 = vadd.f32 %v42_v3, %v41_v2  ;;  %p171_p0 = pnand %p170_p13, %p164_p10 }
  0x23   :  { %v44_v5 = vrot.slane %v43_v4, 1 }
  0x25   :  { %v45_v6 = vadd.f32 %v44_v5, %v43_v4 }
  0x27   :  { %v46_v7 = vmul.f32 0.125, %v45_v6 }
  0x29   :  { %v47_v8 = vsub.f32 %v39_v0, %v46_v7  ;;  %v75_v20 = vmul.f32 0.1, %v46_v7 }
  0x2b   :  { %v48_v9 = vmul.f32 %v47_v8, %v47_v8  ;;  %v76_v24 = vadd.f32 %v75_v20, %v74_v18 }
  0x2d   :  { %v49_v10 = vrot.slane %v48_v9, 4 }
  0x2f   :  { %v50_v11 = vadd.f32 %v49_v10, %v48_v9 }
  0x31   :  { %v51_v12 = vrot.slane %v50_v11, 2 }
  0x33   :  { %v52_v13 = vadd.f32 %v51_v12, %v50_v11 }
  0x35   :  { %v53_v14 = vrot.slane %v52_v13, 1 }
  0x37   :  { %v54_v17 = vadd.f32 %v53_v14, %v52_v13 }
  0x39   :  { %v55_v19 = vmul.f32 0.125, %v54_v17 }
  0x3b   :  { %v56_v22 = vadd.f32 1e-05, %v55_v19  ;;  %v78_v23 = vmul.f32 0.1, %v55_v19 }
  0x3d   :  { %121 = vrsqrt.f32 %v56_v22  ;;  %v79_v25 = vadd.f32 %v78_v23, %v77_v21 }
  0x3f   :  { %v81_v26 = vrot.slane %v79_v25, 7 }
  0x41   :  { %v84_v28 = vsel %vm83_vm0, %v76_v24, %v81_v26 }
  0x42   :  { %85 = vst [vmem:[#allocation8] sm:$0x3] %v84_v28 }
  0x43   :  { %174 = shalt.err (!%p171_p0)
}
  0x44   :  { %105 = dma.vmem_to_hbm [thread:$0]  %s103_s1, 32, %s250_s3, [#allocation9]   ;;  %v64_v29 = vshrl.u32 %v63_v27, 7  ;;  %v58_v30 = vld [vmem:[#allocation5] sm:$0x1] }
  0x45   :  { %v116_v35 = vld [vmem:[#allocation5 + $0x1] ss:$0 sm:$0xff]  ;;  %s214_s25 = smov [#allocation7]  }
  0x46   :  { %v65_v31 = vsub.s32 0, %v64_v29  ;;  %s92_s26 = sshll.u32 %s214_s25, 4  ;;  %s93_s26 = int_to_ptr.vmem [resolvable:$true] %s92_s26 }
  0x47   :  { %s183_s27 = scalar_lea.vmem %s93_s26, 128  ;;  %p188_p2 = scmp.lt.s32.totalorder %s93_s26, %s93_s26 }
  0x48   :  { %p184_p1 = scmp.ne.s32.totalorder %s93_s26, %s183_s27  ;;  %p189_p3 = scmp.lt.s32.totalorder %s183_s27, %s183_s27 }
  0x4a   :  { %v122_v32 = vpop.eup %121  ;;  %p190_p4 = por %p189_p3, %p188_p2 }
  0x4b   :  { %v62_v33 = vmul.f32 %v122_v32, %v58_v30 }
  0x4c   :  { %p191_p5 = pnand %p190_p4, %p184_p1 }
  0x4d   :  { %v66_v34 = vrot.slane %v62_v33, %v65_v31 }
  0x4f   :  { %v67_v36 = vmul.f32 %v66_v34, %v47_v8 }
  0x51   :  { %v72_v37 = vadd.f32 %v116_v35, %v67_v36 }
  0x53   :  { %73 = vst [vmem:[#allocation7] sm:$0xff] %v72_v37 }
  0x54   :  { %194 = shalt.err (!%p191_p5)
}
  0x55   :  { %95 = dma.vmem_to_hbm [thread:$0]  %s93_s26, 128, %s249_s2, [#allocation4]  }
  0x56   :  { %207 = dma.done.wait [#allocation4], 128  }
  0x57   :  { %208 = vsyncadd [#allocation4], 4294967168 }
  0x58   :  { %209 = dma.done.wait [#allocation9], 32  }
  0x59   :  { %210 = vsyncadd [#allocation9], 4294967264 }
  0x5a   :  { %112 = vsyncpa [#allocation3], 1 }
  0x5b   :  { %113 = vsyncpa [#allocation6], 1 }
  0x5c   :  { %114 = vsyncpa [#allocation4], 1 }
  0x5d   :  { %115 = vsyncpa [#allocation9], 1 }

</bundles_post_ra>
